<compile_context>
chip_gen: v7x
topology: tpu7x:2x2x1
jax: 0.10.0
libtpu: 0.0.40
codegen_flags: <defaults>
</compile_context>

<pallas_src>
import math
import functools
import numpy as np
import jax
import jax.numpy as jnp
from jax import lax
from jax.experimental import pallas as pl
from jax.experimental.pallas import tpu as pltpu

EPS = 1e-5
NEG_SLOPE = 0.2
CPAD = 128          # lane-dense channel padding for both kernel outputs
TH = 8              # image rows handled per kernel-A grid step


def _lrelu(y):
    return jnp.where(y >= 0, y, NEG_SLOPE * y)


def fold_bn(g, b, m, v):
    s = g / jnp.sqrt(v + EPS)
    return s, b - m * s


# --------------------------------------------------------------------------
# Kernel A: 1x1 conv (matmul) + folded BN bias + LeakyReLU, writing the
# width-padded flat layout (pad columns zeroed) that kernel B consumes.
# --------------------------------------------------------------------------
def _pw_kernel(x_ref, w_ref, b_ref, o_ref, *, W, Wp, th):
    # x_ref: (1, th*W, Cin) f32   w_ref: (Cin, CPAD) f32 (bn scale folded in)
    # b_ref: (1, CPAD) f32        o_ref: (1, th*Wp, CPAD) bf16
    y = jnp.dot(x_ref[0], w_ref[...], preferred_element_type=jnp.float32)
    y = _lrelu(y + b_ref[...]).astype(o_ref.dtype)          # (th*W, CPAD)
    zpad = jnp.zeros((Wp - W, CPAD), o_ref.dtype)
    for r in range(th):                                     # static, unrolled
        o_ref[0, r * Wp:r * Wp + W, :] = y[r * W:(r + 1) * W, :]
        o_ref[0, r * Wp + W:(r + 1) * Wp, :] = zpad


def pointwise_conv_bn_lrelu(xc3, w, bias, *, H, W, Wp):
    # xc3: (N, H*W, Cin) f32  ->  (N, H*Wp, CPAD) bf16
    N, _, Cin = xc3.shape
    assert H % TH == 0, "H must be a multiple of TH"
    flops = 2 * N * H * W * Cin * CPAD
    bytes_acc = xc3.size * 4 + w.size * 4 + N * H * Wp * CPAD * 2
    return pl.pallas_call(
        functools.partial(_pw_kernel, W=W, Wp=Wp, th=TH),
        out_shape=jax.ShapeDtypeStruct((N, H * Wp, CPAD), jnp.bfloat16),
        grid=(N, H // TH),
        in_specs=[
            pl.BlockSpec((1, TH * W, Cin), lambda n, r: (n, r, 0)),
            pl.BlockSpec((Cin, CPAD), lambda n, r: (0, 0)),
            pl.BlockSpec((1, CPAD), lambda n, r: (0, 0)),
        ],
        out_specs=pl.BlockSpec((1, TH * Wp, CPAD), lambda n, r: (n, r, 0)),
        compiler_params=pltpu.CompilerParams(
            dimension_semantics=("parallel", "parallel"),
            vmem_limit_bytes=32 * 1024 * 1024),
        cost_estimate=pl.CostEstimate(flops=flops, transcendentals=0,
                                      bytes_accessed=bytes_acc),
    )(xc3, w, bias)


# --------------------------------------------------------------------------
# Kernel B: sequential Res2 branches fused with conv3 + bn3 + LeakyReLU.
# --------------------------------------------------------------------------
def _res2_fused_kernel(x_ref, w3_ref, b3_ref, wc3_ref, bc3_ref, o_ref, sp_ref,
                       *, H, W, Wp, width, nums, scale):
    # x_ref  : (1, H*Wp, CPAD) bf16 -- conv1 output; chunk i lives at lanes
    #          [i*width, (i+1)*width); pad columns (c >= W) are already zero.
    # w3_ref : (nums, 9*width, width) bf16 -- 3x3 taps stacked along K,
    #          BN scale folded in.
    # b3_ref : (nums, 1, width) f32
    # wc3_ref: (scale, width, CPAD) bf16 -- conv3 rows per chunk, bn3-scaled.
    # bc3_ref: (1, CPAD) f32
    # o_ref  : (1, H*Wp, CPAD) f32 -- also used as the conv3 accumulator.
    # sp_ref : (Hp*Wp + 8, width) f32 scratch -- zero-haloed flat padded plane.
    HWp = H * Wp

    # valid-column mask (c = row % Wp < W); keeps the halo slots zero when the
    # carry is stored back with a single contiguous sublane store.
    col = lax.broadcasted_iota(jnp.int32, (HWp, 1), 0) % Wp
    mask = (col < W).astype(jnp.float32)

    sp_ref[...] = jnp.zeros_like(sp_ref)      # zero all halos once per batch
    o_ref[...] = jnp.zeros_like(o_ref)        # conv3 accumulator init

    def chunk(i):                             # (HWp, width) bf16 lane slice
        return x_ref[0, :, i * width:(i + 1) * width]

    # branch 0 input: shuffled chunk 0 (its pad columns are already zero, so
    # this single contiguous store also writes zeros into the shared halos).
    sp_ref[Wp + 1:Wp + 1 + HWp, :] = chunk(0).astype(jnp.float32)

    for i in range(nums):
        # 3x3 conv as ONE K = 9*width contraction over contiguous tap slices
        taps = [sp_ref[dy * Wp + dx:dy * Wp + dx + HWp, :]
                for dy in range(3) for dx in range(3)]
        patch = jnp.concatenate(taps, axis=-1).astype(jnp.bfloat16)
        y = jnp.dot(patch, w3_ref[i], preferred_element_type=jnp.float32)
        y = _lrelu(y + b3_ref[i])                          # (HWp, width) f32

        # fused conv3: accumulate this branch straight into the output block
        o_ref[0] = o_ref[0] + jnp.dot(y.astype(jnp.bfloat16), wc3_ref[i],
                                      preferred_element_type=jnp.float32)

        if i + 1 < nums:
            # carry: sp_{i+1} = branch_i_output + spx[i+1]; masking the pad
            # columns keeps every halo slot zero with one contiguous store.
            nxt = (chunk(i + 1).astype(jnp.float32) + y) * mask
            sp_ref[Wp + 1:Wp + 1 + HWp, :] = nxt

    if scale != 1:
        # stype='normal': last chunk passes straight through to conv3
        o_ref[0] = o_ref[0] + jnp.dot(chunk(nums), wc3_ref[scale - 1],
                                      preferred_element_type=jnp.float32)

    o_ref[0] = _lrelu(o_ref[0] + bc3_ref[...])


def res2_fused(mid, w3cat, b3, wc3, bc3, *, H, W, Wp, width, nums, scale):
    # TODO(synk): for large H add a spatial row-tile grid axis (1-row halo) so
    # the per-batch block fits v7x's 64 MiB VMEM and feeds both TensorCores.
    N = mid.shape[0]
    HWp = H * Wp
    assert HWp % 8 == 0
    sp_rows = (H + 2) * Wp + 8     # +8 keeps the (dy=2,dx=2) tap slice in-bounds
    flops = 2 * N * HWp * (nums * 9 * width * width + scale * width * CPAD)
    bytes_acc = (mid.size * 2 + w3cat.size * 2 + wc3.size * 2
                 + N * HWp * CPAD * 4)
    kern = functools.partial(_res2_fused_kernel, H=H, W=W, Wp=Wp, width=width,
                             nums=nums, scale=scale)
    return pl.pallas_call(
        kern,
        out_shape=jax.ShapeDtypeStruct((N, HWp, CPAD), jnp.float32),
        grid=(N,),
        in_specs=[
            pl.BlockSpec((1, HWp, CPAD), lambda n: (n, 0, 0)),
            pl.BlockSpec((nums, 9 * width, width), lambda n: (0, 0, 0)),
            pl.BlockSpec((nums, 1, width), lambda n: (0, 0, 0)),
            pl.BlockSpec((scale, width, CPAD), lambda n: (0, 0, 0)),
            pl.BlockSpec((1, CPAD), lambda n: (0, 0)),
        ],
        out_specs=pl.BlockSpec((1, HWp, CPAD), lambda n: (n, 0, 0)),
        scratch_shapes=[pltpu.VMEM((sp_rows, width), jnp.float32)],
        compiler_params=pltpu.CompilerParams(
            dimension_semantics=("parallel",),
            vmem_limit_bytes=32 * 1024 * 1024),
        cost_estimate=pl.CostEstimate(flops=flops, transcendentals=0,
                                      bytes_accessed=bytes_acc),
    )(mid, w3cat, b3, wc3, bc3)


# --------------------------------------------------------------------------
# JAX glue
# --------------------------------------------------------------------------
def upsample2x_bilinear_nhwc(x):
    # matches torch F.interpolate(scale_factor=2, mode='bilinear',
    #                             align_corners=False)
    def up_axis(z, axis):
        n = z.shape[axis]
        src = (jnp.arange(2 * n) + 0.5) / 2.0 - 0.5
        src = jnp.clip(src, 0.0, n - 1.0)
        i0 = jnp.floor(src).astype(jnp.int32)
        i1 = jnp.minimum(i0 + 1, n - 1)
        w1 = (src - i0.astype(src.dtype)).astype(z.dtype)
        w0 = 1.0 - w1
        shape = [1] * z.ndim
        shape[axis] = 2 * n
        return (jnp.take(z, i0, axis=axis) * w0.reshape(shape)
                + jnp.take(z, i1, axis=axis) * w1.reshape(shape))

    return up_axis(up_axis(x, 1), 2)


def init_params(key, inplanes, planes, baseWidth=26, scale=4, expansion=1):
    width = int(math.floor(planes * (baseWidth / 64.0)))
    nums = 1 if scale == 1 else scale - 1
    cin1 = inplanes * 2
    cmid = width * scale
    cout = planes * expansion
    ks = jax.random.split(key, 6)

    def bn_vec(k, shape):
        k1, k2, k3, k4 = jax.random.split(k, 4)
        g = jax.random.uniform(k1, shape, minval=0.5, maxval=1.5)
        b = jax.random.normal(k2, shape) * 0.1
        m = jax.random.normal(k3, shape) * 0.1
        v = jax.random.uniform(k4, shape, minval=0.5, maxval=1.5)
        return g, b, m, v

    return dict(
        width=width, scale=scale, nums=nums,
        w1=jax.random.normal(ks[0], (cin1, cmid), jnp.float32) * 0.2,
        bn1=bn_vec(ks[1], (cmid,)),
        w3=jax.random.normal(ks[2], (nums, 9, width, width), jnp.float32) * 0.1,
        bns=bn_vec(ks[3], (nums, width)),
        wc3=jax.random.normal(ks[4], (cmid, cout), jnp.float32) * 0.1,
        bn3=bn_vec(ks[5], (cout,)),
    )


def shuffle_res2_block_forward(x_nchw, c_nchw, P):
    # TODO(synk): stype='stage' (AvgPool branch) and the downsample branch are
    # not implemented; defaults are stype='normal', downsample=False (the
    # PyTorch downsample path also references an undefined `residual`).
    scale, width, nums = P["scale"], P["width"], P["nums"]
    x = jnp.transpose(x_nchw, (0, 2, 3, 1)).astype(jnp.float32)
    c = jnp.transpose(c_nchw, (0, 2, 3, 1)).astype(jnp.float32)
    x = upsample2x_bilinear_nhwc(x)
    xc = jnp.concatenate([x, c], axis=-1)
    N, H, W, Cin1 = xc.shape
    cmid = width * scale
    cout = P["wc3"].shape[1]
    Wp = W + 2
    assert cmid <= CPAD and cout <= CPAD

    # conv1: fold channel_shuffle(groups=width) into the output column order
    # and the bn1 scale into the weight columns; pad out channels to 128 so
    # the kernel's stores are lane-dense.
    j = jnp.arange(cmid)
    perm = (j % width) * scale + (j // width)
    s1, b1 = fold_bn(*P["bn1"])
    w1p = jnp.pad(P["w1"][:, perm] * s1[perm][None, :],
                  ((0, 0), (0, CPAD - cmid)))
    b1p = jnp.pad(b1[perm], (0, CPAD - cmid)).reshape(1, CPAD)

    mid = pointwise_conv_bn_lrelu(xc.reshape(N, H * W, Cin1), w1p, b1p,
                                  H=H, W=W, Wp=Wp)      # (N, H*Wp, 128) bf16

    # Res2 branch weights: BN scale folded in, 9 taps stacked along K.
    g, b, m, v = P["bns"]
    s3, b3 = fold_bn(g, b, m, v)                         # (nums, width)
    w3cat = (P["w3"] * s3[:, None, None, :]).reshape(nums, 9 * width, width)
    w3cat = w3cat.astype(jnp.bfloat16)
    b3r = b3.reshape(nums, 1, width)

    # conv3: bn3 scale folded in, rows grouped per input chunk, lane-padded.
    sc3, bc3 = fold_bn(*P["bn3"])
    wc3p = jnp.pad(P["wc3"] * sc3[None, :], ((0, 0), (0, CPAD - cout)))
    wc3p = wc3p.reshape(scale, width, CPAD).astype(jnp.bfloat16)
    bc3p = jnp.pad(bc3, (0, CPAD - cout)).reshape(1, CPAD)

    outp = res2_fused(mid, w3cat, b3r, wc3p, bc3p, H=H, W=W, Wp=Wp,
                      width=width, nums=nums, scale=scale)  # (N,H*Wp,128) f32

    out = outp.reshape(N, H, Wp, CPAD)[:, :, :W, :cout]
    return jnp.transpose(out, (0, 3, 1, 2))              # back to NCHW


# --------------------------------------------------------------------------
# Pure-JAX reference (lax.conv) used only for the correctness check
# --------------------------------------------------------------------------
def ref_forward(x_nchw, c_nchw, P):
    scale, width, nums = P["scale"], P["width"], P["nums"]
    x = jnp.transpose(x_nchw, (0, 2, 3, 1)).astype(jnp.float32)
    c = jnp.transpose(c_nchw, (0, 2, 3, 1)).astype(jnp.float32)
    x = upsample2x_bilinear_nhwc(x)
    xc = jnp.concatenate([x, c], axis=-1)
    dn = ("NHWC", "HWIO", "NHWC")

    def conv1x1(z, w):
        return lax.conv_general_dilated(z, w.reshape(1, 1, *w.shape), (1, 1),
                                        "VALID", dimension_numbers=dn)

    def bn(z, g, b, m, v):
        return (z - m) / jnp.sqrt(v + EPS) * g + b

    out = _lrelu(bn(conv1x1(xc, P["w1"]), *P["bn1"]))
    cmid = width * scale
    j = jnp.arange(cmid)
    perm = (j % width) * scale + (j // width)
    out = out[..., perm]
    spx = [out[..., i * width:(i + 1) * width] for i in range(scale)]
    g, b, m, v = P["bns"]
    pieces, sp = [], None
    for i in range(nums):
        spi = spx[i] if i == 0 else sp + spx[i]
        w = P["w3"][i].reshape(3, 3, width, width)
        y = lax.conv_general_dilated(spi, w, (1, 1), "SAME",
                                     dimension_numbers=dn)
        sp = _lrelu(bn(y, g[i], b[i], m[i], v[i]))
        pieces.append(sp)
    if scale != 1:
        pieces.append(spx[nums])
    out = jnp.concatenate(pieces, axis=-1)
    out = _lrelu(bn(conv1x1(out, P["wc3"]), *P["bn3"]))
    return jnp.transpose(out, (0, 3, 1, 2))


if __name__ == "__main__":
    key = jax.random.PRNGKey(0)
    kx, kc, kp = jax.random.split(key, 3)
    inplanes, planes = 4, 64
    # x is 8x8 (upsampled 2x inside), c is 16x16 to match after upsampling
    x = jax.random.normal(kx, (2, inplanes, 8, 8), jnp.float32)
    c = jax.random.normal(kc, (2, inplanes, 16, 16), jnp.float32)
    P = init_params(kp, inplanes, planes, baseWidth=26, scale=4, expansion=1)

    with jax.default_matmul_precision("float32"):
        out = jax.block_until_ready(shuffle_res2_block_forward(x, c, P))
        ref = jax.block_until_ready(ref_forward(x, c, P))

    assert out.shape == (2, planes, 16, 16), out.shape
    # bf16 intermediate / bf16 matmul inputs with f32 accumulation vs the
    # pure-f32 lax reference -> loose-but-bug-catching tolerance.
    np.testing.assert_allclose(np.asarray(out), np.asarray(ref),
                               rtol=5e-2, atol=5e-2)
    print("KERNEL_OK")
</pallas_src>

<mosaic_0001>
module attributes {stable_mosaic.version = 11 : i64} {
  func.func @_pw_kernel(%arg0: i32, %arg1: i32, %arg2: memref<1x128x8xf32, #tpu.memory_space<vmem>>, %arg3: memref<8x128xf32, #tpu.memory_space<vmem>>, %arg4: memref<1x128xf32, #tpu.memory_space<vmem>>, %arg5: memref<1x144x128xbf16, #tpu.memory_space<vmem>>) attributes {dimension_semantics = [#tpu.dimension_semantics<parallel>, #tpu.dimension_semantics<parallel>], iteration_bounds = array<i64: 2, 2>, scalar_prefetch = 0 : i64, scratch_operands = 0 : i64, tpu.core_type = #tpu.core_type<tc>, window_params = [{transform_indices = @transform_0, window_bounds = array<i64: 1, 128, 8>}, {pipeline_mode = #tpu.pipeline_mode<synchronous>, transform_indices = @transform_1, window_bounds = array<i64: 8, 128>}, {pipeline_mode = #tpu.pipeline_mode<synchronous>, transform_indices = @transform_2, window_bounds = array<i64: 1, 128>}, {transform_indices = @transform_3, window_bounds = array<i64: 1, 144, 128>}]} {
    %c0 = arith.constant 0 : index
    %c0_0 = arith.constant 0 : index
    %c0_1 = arith.constant 0 : index
    %0 = vector.load %arg2[%c0, %c0_0, %c0_1] : memref<1x128x8xf32, #tpu.memory_space<vmem>>, vector<1x128x8xf32>
    %1 = vector.shape_cast %0 : vector<1x128x8xf32> to vector<128x8xf32>
    %c0_2 = arith.constant 0 : index
    %c0_3 = arith.constant 0 : index
    %2 = vector.load %arg3[%c0_2, %c0_3] : memref<8x128xf32, #tpu.memory_space<vmem>>, vector<8x128xf32>
    %cst = arith.constant dense<0.000000e+00> : vector<128x128xf32>
    %3 = tpu.matmul %1, %2, %cst {dimension_numbers = #tpu.dot_dimension_numbers<[1], [0], [0], [1], [0, 0, 1, 1], [], []>, precision = #tpu.contract_precision<fp32>} : vector<128x8xf32>, vector<8x128xf32>, vector<128x128xf32> -> vector<128x128xf32>
    %c0_4 = arith.constant 0 : index
    %c0_5 = arith.constant 0 : index
    %4 = vector.load %arg4[%c0_4, %c0_5] : memref<1x128xf32, #tpu.memory_space<vmem>>, vector<1x128xf32>
    %5 = vector.broadcast %4 : vector<1x128xf32> to vector<128x128xf32>
    %6 = arith.addf %3, %5 : vector<128x128xf32>
    %cst_6 = arith.constant 0.000000e+00 : f32
    %7 = vector.broadcast %cst_6 : f32 to vector<128x128xf32>
    %8 = arith.cmpf oge, %6, %7 : vector<128x128xf32>
    %cst_7 = arith.constant 2.000000e-01 : f32
    %9 = vector.broadcast %cst_7 : f32 to vector<128x128xf32>
    %10 = arith.mulf %9, %6 : vector<128x128xf32>
    %11 = arith.select %8, %6, %10 : vector<128x128xi1>, vector<128x128xf32>
    %12 = arith.truncf %11 : vector<128x128xf32> to vector<128x128xbf16>
    %cst_8 = arith.constant 0.000000e+00 : bf16
    %13 = vector.broadcast %cst_8 : bf16 to vector<2x128xbf16>
    %14 = vector.extract_strided_slice %12 {offsets = [0, 0], sizes = [16, 128], strides = [1, 1]} : vector<128x128xbf16> to vector<16x128xbf16>
    %c0_9 = arith.constant 0 : index
    %c0_10 = arith.constant 0 : index
    %c0_11 = arith.constant 0 : index
    %15 = vector.load %arg5[%c0_9, %c0_10, %c0_11] : memref<1x144x128xbf16, #tpu.memory_space<vmem>>, vector<1x16x128xbf16>
    %16 = vector.shape_cast %15 : vector<1x16x128xbf16> to vector<16x128xbf16>
    %17 = vector.shape_cast %14 : vector<16x128xbf16> to vector<1x16x128xbf16>
    tpu.vector_store %arg5[%c0_9, %c0_10, %c0_11], %17 {strides = array<i32>} : memref<1x144x128xbf16, #tpu.memory_space<vmem>>, vector<1x16x128xbf16>,
    %c0_12 = arith.constant 0 : index
    %c16 = arith.constant 16 : index
    %c0_13 = arith.constant 0 : index
    %18 = vector.load %arg5[%c0_12, %c16, %c0_13] : memref<1x144x128xbf16, #tpu.memory_space<vmem>>, vector<1x2x128xbf16>
    %19 = vector.shape_cast %18 : vector<1x2x128xbf16> to vector<2x128xbf16>
    %20 = vector.shape_cast %13 : vector<2x128xbf16> to vector<1x2x128xbf16>
    tpu.vector_store %arg5[%c0_12, %c16, %c0_13], %20 {strides = array<i32>} : memref<1x144x128xbf16, #tpu.memory_space<vmem>>, vector<1x2x128xbf16>,
    %21 = vector.extract_strided_slice %12 {offsets = [16, 0], sizes = [16, 128], strides = [1, 1]} : vector<128x128xbf16> to vector<16x128xbf16>
    %c0_14 = arith.constant 0 : index
    %c18 = arith.constant 18 : index
    %c0_15 = arith.constant 0 : index
    %22 = vector.load %arg5[%c0_14, %c18, %c0_15] : memref<1x144x128xbf16, #tpu.memory_space<vmem>>, vector<1x16x128xbf16>
    %23 = vector.shape_cast %22 : vector<1x16x128xbf16> to vector<16x128xbf16>
    %24 = vector.shape_cast %21 : vector<16x128xbf16> to vector<1x16x128xbf16>
    tpu.vector_store %arg5[%c0_14, %c18, %c0_15], %24 {strides = array<i32>} : memref<1x144x128xbf16, #tpu.memory_space<vmem>>, vector<1x16x128xbf16>,
    %c0_16 = arith.constant 0 : index
    %c34 = arith.constant 34 : index
    %c0_17 = arith.constant 0 : index
    %25 = vector.load %arg5[%c0_16, %c34, %c0_17] : memref<1x144x128xbf16, #tpu.memory_space<vmem>>, vector<1x2x128xbf16>
    %26 = vector.shape_cast %25 : vector<1x2x128xbf16> to vector<2x128xbf16>
    %27 = vector.shape_cast %13 : vector<2x128xbf16> to vector<1x2x128xbf16>
    tpu.vector_store %arg5[%c0_16, %c34, %c0_17], %27 {strides = array<i32>} : memref<1x144x128xbf16, #tpu.memory_space<vmem>>, vector<1x2x128xbf16>,
    %28 = vector.extract_strided_slice %12 {offsets = [32, 0], sizes = [16, 128], strides = [1, 1]} : vector<128x128xbf16> to vector<16x128xbf16>
    %c0_18 = arith.constant 0 : index
    %c36 = arith.constant 36 : index
    %c0_19 = arith.constant 0 : index
    %29 = vector.load %arg5[%c0_18, %c36, %c0_19] : memref<1x144x128xbf16, #tpu.memory_space<vmem>>, vector<1x16x128xbf16>
    %30 = vector.shape_cast %29 : vector<1x16x128xbf16> to vector<16x128xbf16>
    %31 = vector.shape_cast %28 : vector<16x128xbf16> to vector<1x16x128xbf16>
    tpu.vector_store %arg5[%c0_18, %c36, %c0_19], %31 {strides = array<i32>} : memref<1x144x128xbf16, #tpu.memory_space<vmem>>, vector<1x16x128xbf16>,
    %c0_20 = arith.constant 0 : index
    %c52 = arith.constant 52 : index
    %c0_21 = arith.constant 0 : index
    %32 = vector.load %arg5[%c0_20, %c52, %c0_21] : memref<1x144x128xbf16, #tpu.memory_space<vmem>>, vector<1x2x128xbf16>
    %33 = vector.shape_cast %32 : vector<1x2x128xbf16> to vector<2x128xbf16>
    %34 = vector.shape_cast %13 : vector<2x128xbf16> to vector<1x2x128xbf16>
    tpu.vector_store %arg5[%c0_20, %c52, %c0_21], %34 {strides = array<i32>} : memref<1x144x128xbf16, #tpu.memory_space<vmem>>, vector<1x2x128xbf16>,
    %35 = vector.extract_strided_slice %12 {offsets = [48, 0], sizes = [16, 128], strides = [1, 1]} : vector<128x128xbf16> to vector<16x128xbf16>
    %c0_22 = arith.constant 0 : index
    %c54 = arith.constant 54 : index
    %c0_23 = arith.constant 0 : index
    %36 = vector.load %arg5[%c0_22, %c54, %c0_23] : memref<1x144x128xbf16, #tpu.memory_space<vmem>>, vector<1x16x128xbf16>
    %37 = vector.shape_cast %36 : vector<1x16x128xbf16> to vector<16x128xbf16>
    %38 = vector.shape_cast %35 : vector<16x128xbf16> to vector<1x16x128xbf16>
    tpu.vector_store %arg5[%c0_22, %c54, %c0_23], %38 {strides = array<i32>} : memref<1x144x128xbf16, #tpu.memory_space<vmem>>, vector<1x16x128xbf16>,
    %c0_24 = arith.constant 0 : index
    %c70 = arith.constant 70 : index
    %c0_25 = arith.constant 0 : index
    %39 = vector.load %arg5[%c0_24, %c70, %c0_25] : memref<1x144x128xbf16, #tpu.memory_space<vmem>>, vector<1x2x128xbf16>
    %40 = vector.shape_cast %39 : vector<1x2x128xbf16> to vector<2x128xbf16>
    %41 = vector.shape_cast %13 : vector<2x128xbf16> to vector<1x2x128xbf16>
    tpu.vector_store %arg5[%c0_24, %c70, %c0_25], %41 {strides = array<i32>} : memref<1x144x128xbf16, #tpu.memory_space<vmem>>, vector<1x2x128xbf16>,
    %42 = vector.extract_strided_slice %12 {offsets = [64, 0], sizes = [16, 128], strides = [1, 1]} : vector<128x128xbf16> to vector<16x128xbf16>
    %c0_26 = arith.constant 0 : index
    %c72 = arith.constant 72 : index
    %c0_27 = arith.constant 0 : index
    %43 = vector.load %arg5[%c0_26, %c72, %c0_27] : memref<1x144x128xbf16, #tpu.memory_space<vmem>>, vector<1x16x128xbf16>
    %44 = vector.shape_cast %43 : vector<1x16x128xbf16> to vector<16x128xbf16>
    %45 = vector.shape_cast %42 : vector<16x128xbf16> to vector<1x16x128xbf16>
    tpu.vector_store %arg5[%c0_26, %c72, %c0_27], %45 {strides = array<i32>} : memref<1x144x128xbf16, #tpu.memory_space<vmem>>, vector<1x16x128xbf16>,
    %c0_28 = arith.constant 0 : index
    %c88 = arith.constant 88 : index
    %c0_29 = arith.constant 0 : index
    %46 = vector.load %arg5[%c0_28, %c88, %c0_29] : memref<1x144x128xbf16, #tpu.memory_space<vmem>>, vector<1x2x128xbf16>
    %47 = vector.shape_cast %46 : vector<1x2x128xbf16> to vector<2x128xbf16>
    %48 = vector.shape_cast %13 : vector<2x128xbf16> to vector<1x2x128xbf16>
    tpu.vector_store %arg5[%c0_28, %c88, %c0_29], %48 {strides = array<i32>} : memref<1x144x128xbf16, #tpu.memory_space<vmem>>, vector<1x2x128xbf16>,
    %49 = vector.extract_strided_slice %12 {offsets = [80, 0], sizes = [16, 128], strides = [1, 1]} : vector<128x128xbf16> to vector<16x128xbf16>
    %c0_30 = arith.constant 0 : index
    %c90 = arith.constant 90 : index
    %c0_31 = arith.constant 0 : index
    %50 = vector.load %arg5[%c0_30, %c90, %c0_31] : memref<1x144x128xbf16, #tpu.memory_space<vmem>>, vector<1x16x128xbf16>
    %51 = vector.shape_cast %50 : vector<1x16x128xbf16> to vector<16x128xbf16>
    %52 = vector.shape_cast %49 : vector<16x128xbf16> to vector<1x16x128xbf16>
    tpu.vector_store %arg5[%c0_30, %c90, %c0_31], %52 {strides = array<i32>} : memref<1x144x128xbf16, #tpu.memory_space<vmem>>, vector<1x16x128xbf16>,
    %c0_32 = arith.constant 0 : index
    %c106 = arith.constant 106 : index
    %c0_33 = arith.constant 0 : index
    %53 = vector.load %arg5[%c0_32, %c106, %c0_33] : memref<1x144x128xbf16, #tpu.memory_space<vmem>>, vector<1x2x128xbf16>
    %54 = vector.shape_cast %53 : vector<1x2x128xbf16> to vector<2x128xbf16>
    %55 = vector.shape_cast %13 : vector<2x128xbf16> to vector<1x2x128xbf16>
    tpu.vector_store %arg5[%c0_32, %c106, %c0_33], %55 {strides = array<i32>} : memref<1x144x128xbf16, #tpu.memory_space<vmem>>, vector<1x2x128xbf16>,
    %56 = vector.extract_strided_slice %12 {offsets = [96, 0], sizes = [16, 128], strides = [1, 1]} : vector<128x128xbf16> to vector<16x128xbf16>
    %c0_34 = arith.constant 0 : index
    %c108 = arith.constant 108 : index
    %c0_35 = arith.constant 0 : index
    %57 = vector.load %arg5[%c0_34, %c108, %c0_35] : memref<1x144x128xbf16, #tpu.memory_space<vmem>>, vector<1x16x128xbf16>
    %58 = vector.shape_cast %57 : vector<1x16x128xbf16> to vector<16x128xbf16>
    %59 = vector.shape_cast %56 : vector<16x128xbf16> to vector<1x16x128xbf16>
    tpu.vector_store %arg5[%c0_34, %c108, %c0_35], %59 {strides = array<i32>} : memref<1x144x128xbf16, #tpu.memory_space<vmem>>, vector<1x16x128xbf16>,
    %c0_36 = arith.constant 0 : index
    %c124 = arith.constant 124 : index
    %c0_37 = arith.constant 0 : index
    %60 = vector.load %arg5[%c0_36, %c124, %c0_37] : memref<1x144x128xbf16, #tpu.memory_space<vmem>>, vector<1x2x128xbf16>
    %61 = vector.shape_cast %60 : vector<1x2x128xbf16> to vector<2x128xbf16>
    %62 = vector.shape_cast %13 : vector<2x128xbf16> to vector<1x2x128xbf16>
    tpu.vector_store %arg5[%c0_36, %c124, %c0_37], %62 {strides = array<i32>} : memref<1x144x128xbf16, #tpu.memory_space<vmem>>, vector<1x2x128xbf16>,
    %63 = vector.extract_strided_slice %12 {offsets = [112, 0], sizes = [16, 128], strides = [1, 1]} : vector<128x128xbf16> to vector<16x128xbf16>
    %c0_38 = arith.constant 0 : index
    %c126 = arith.constant 126 : index
    %c0_39 = arith.constant 0 : index
    %64 = vector.load %arg5[%c0_38, %c126, %c0_39] : memref<1x144x128xbf16, #tpu.memory_space<vmem>>, vector<1x16x128xbf16>
    %65 = vector.shape_cast %64 : vector<1x16x128xbf16> to vector<16x128xbf16>
    %66 = vector.shape_cast %63 : vector<16x128xbf16> to vector<1x16x128xbf16>
    tpu.vector_store %arg5[%c0_38, %c126, %c0_39], %66 {strides = array<i32>} : memref<1x144x128xbf16, #tpu.memory_space<vmem>>, vector<1x16x128xbf16>,
    %c0_40 = arith.constant 0 : index
    %c142 = arith.constant 142 : index
    %c0_41 = arith.constant 0 : index
    %67 = vector.load %arg5[%c0_40, %c142, %c0_41] : memref<1x144x128xbf16, #tpu.memory_space<vmem>>, vector<1x2x128xbf16>
    %68 = vector.shape_cast %67 : vector<1x2x128xbf16> to vector<2x128xbf16>
    %69 = vector.shape_cast %13 : vector<2x128xbf16> to vector<1x2x128xbf16>
    tpu.vector_store %arg5[%c0_40, %c142, %c0_41], %69 {strides = array<i32>} : memref<1x144x128xbf16, #tpu.memory_space<vmem>>, vector<1x2x128xbf16>,
    return
  }
  func.func @transform_0(%arg0: i32, %arg1: i32) -> (i32, i32, i32) {
    %c0_i32 = arith.constant 0 : i32
    %c0_i32_0 = arith.constant 0 : i32
    return %arg0, %arg1, %c0_i32 : i32, i32, i32
  }
  func.func @transform_1(%arg0: i32, %arg1: i32) -> (i32, i32) {
    %c0_i32 = arith.constant 0 : i32
    %c0_i32_0 = arith.constant 0 : i32
    %c0_i32_1 = arith.constant 0 : i32
    return %c0_i32, %c0_i32_0 : i32, i32
  }
  func.func @transform_2(%arg0: i32, %arg1: i32) -> (i32, i32) {
    %c0_i32 = arith.constant 0 : i32
    %c0_i32_0 = arith.constant 0 : i32
    %c0_i32_1 = arith.constant 0 : i32
    return %c0_i32, %c0_i32_0 : i32, i32
  }
  func.func @transform_3(%arg0: i32, %arg1: i32) -> (i32, i32, i32) {
    %c0_i32 = arith.constant 0 : i32
    %c0_i32_0 = arith.constant 0 : i32
    return %arg0, %arg1, %c0_i32 : i32, i32, i32
  }
}

</mosaic_0001>

<bundles_post_ra>
// kernel: tpu_custom_call.1
= control target key start
LH: loop header
LB: loop body
LE: loop exit
PB: predicated region body
PF: predicated region fallthrough
CT: control target
= control target key end

     0   :  { %8 = vsyncpa [#allocation3], 0  ;;  %s2707_s0 = inlined_call_operand.vmem [shape: f32[2,256,8], index: 0, kind: input, shape index: {}]   ;;  %s2708_s1 = inlined_call_operand.vmem [shape: f32[8,128], index: 1, kind: input, shape index: {}]   ;;  %s2709_s2 = inlined_call_operand.vmem [shape: f32[1,128], index: 2, kind: input, shape index: {}]   ;;  %s2710_s3 = inlined_call_operand.hbm [shape: bf16[2,288,128], index: 3, kind: output, shape index: {}]  }
   0x1   :  { %10 = vsyncpa [#allocation3 + $0x1], 0  ;;  %s2249_s12 = smov 0   ;;  %s2251_s13 = smov 0  }
   0x2   :  { %s2253_s14 = smov 0   ;;  %s2255_s15 = smov 0  }
   0x3   :  { %s2257_s16 = smov 0   ;;  %s2259_s17 = smov 0  }
   0x4   :  { %s2261_s18 = smov 0   ;;  %s2263_s19 = smov 0  }
   0x5 LB: > { %s1650_s20 = sadd.s32 4294967295, %s2223_s19   ;;  %s1651_s21 = sadd.s32 4294967294, %s2223_s19   ;;  %s2223_s19 = sphi %s2263_s19, %s16_s19   ;;  %s2219_s18 = sphi %s2261_s18, %s2725_s18   ;;  %s2215_s17 = sphi %s2259_s17, %s2724_s17   ;;  %s2211_s16 = sphi %s2257_s16, %s2723_s16   ;;  %s2207_s15 = sphi %s2255_s15, %s2722_s15   ;;  %s2203_s14 = sphi %s2253_s14, %s2721_s14   ;;  %s2199_s13 = sphi %s2251_s13, %s2720_s13   ;;  %s2195_s12 = sphi %s2249_s12, %s2719_s12  }
   0x6   : > { %s25_s22 = sadd.s32 1, %s2215_s17  ;;  %s28_s23 = sadd.s32 1, %s2219_s18 }
   0x7   : > { %p26_p0 = scmp.ge.s32.totalorder %s25_s22, 2  ;;  %p117_p1 = scmp.ne.s32.totalorder %s2203_s14, %s2199_s13 }
   0x8   : > { %p118_p2 = scmp.eq.s32.totalorder %s1650_s20, 3  ;;  %p123_p5 = scmp.ne.s32.totalorder %s2199_s13, %s2195_s12 }
   0x9   : > { %s2727_s22 = smov (%p26_p0, %s25_s22), 0  ;;  %s2729_s23 = smov (!%p26_p0, %s28_s23), %s2219_s18 }
   0xa   : > { %s103_s24 = ssub.s32 %s2215_s17, %s2727_s22  ;;  %p2300_p3 = por %p118_p2, %p117_p1 }
   0xb   : > { %p30_p4 = scmp.ge.s32.totalorder %s2729_s23, 2  ;;  %p124_p6 = scmp.eq.s32.totalorder %s1651_s21, 3 }
   0xc   : > { %p1654_p7 = scmp.ge.s32.totalorder %s2223_s19, 1  ;;  %p161_p9 = scmp.lt.s32.totalorder %s2223_s19, 5 }
   0xd   : > { %s2731_s23 = smov (%p30_p4, %s2729_s23), 0  ;;  %p2309_p8 = por %p124_p6, %p123_p5 }
   0xe   : > { %s102_s27 = ssub.s32 %s2219_s18, %s2731_s23  ;;  %s107_s28 = sadd.s32 1, %s2203_s14 }
   0xf   : > { %s104_s29 = sor.u32 %s103_s24, %s102_s27  ;;  %p162_p10 = pnand %p1654_p7, %p161_p9 }
  0x10   : > { %p105_p11 = scmp.eq.s32.totalorder %s104_s29, 0  ;;  %v217_v0 = vld [vmem:[%s2708_s1] sm:$0xff] (!%p162_p10)  ;;  %s1655_s6 = sshll.u32 (!%p162_p10), %s2207_s15, 4  ;;  %vm225_vm0 = vcmask (!%p162_p10), 64512   ;;  %vm1436_vm5 = vcmask (!%p162_p10), 1040384   ;;  %vm1437_vm6 = vcmask (!%p162_p10), 1044484  }
  0x11   : > { %165 = sbr.rel (%p162_p10) target bundleno = 379 (0x17b), region = 32  ;;  %p190_p12 = scmp.lt.s32.totalorder (!%p162_p10), %s2211_s16, 1  ;;  %v2325_v1 = vand.u32 (!%p162_p10), 4294901760, %v217_v0  ;;  %vm1456_vm7 = vcmask (!%p162_p10), 1041408   ;;  %vm1457_vm8 = vcmask (!%p162_p10), 1045508   ;;  %vm1476_vm10 = vcmask (!%p162_p10), 1042432   ;;  %vm2587_vm13 = vmor (!%p162_p10), %vm1436_vm5, %vm1437_vm6 }
  0x12   : > { %s2318_s30 = scalar_select %p105_p11, %s2203_s14, %s107_s28  }
  0x13   : > { %p192_p13 = scmp.lt.s32.totalorder (!%p162_p10), %s1655_s6, 31  ;;  %1879 = vmatprep.subr.mxu0 (!%p162_p10), %v2325_v1  ;;  %1801 = vmatprep.subr.mxu1 (!%p162_p10), %v2325_v1  ;;  %v2331_v2 = vsub.f32 (!%p162_p10), %v217_v0, %v2325_v1  ;;  %s186_s24 = sand.u32 (!%p162_p10), 1, %s2199_s13   ;;  %vm1477_vm12 = vcmask (!%p162_p10), 1046532  }
  0x14   : > { %1880 = vmatpush3.msra.mxu0 (!%p162_p10), %v2325_v1  ;;  %1802 = vmatpush3.msra.mxu1 (!%p162_p10), %v2325_v1  ;;  %s2053_s27 = smul.u32 (!%p162_p10), 72, %s186_s24  ;;  %s2655_s11 = scalar_lea.sflag (!%p162_p10), [#allocation3], %s186_s24 }
  0x15   : > { %v503_v3 = vand.u32 (!%p162_p10), 4294901760, %v2331_v2  ;;  %s1560_s5 = smul.u32 (!%p162_p10), 18, %s2207_s15 }
  0x16   : > { %s2561_s28 = scalar_lea.vmem (!%p162_p10), [#allocation2], %s2053_s27 }
  0x17   : > { %v504_v4 = vsub.f32 (!%p162_p10), %v2331_v2, %v503_v3  ;;  %1905 = vmatprep.subr.mxu0 (!%p162_p10), %v503_v3 }
  0x18   : > { %s191_s7 = scalar_select %p190_p12, %s2211_s16, 1 }
  0x19   : > { %s2733_s6 = smov (!%p192_p13, %s1655_s6), 31  ;;  %v2347_v10 = vand.u32 4294901760, %v504_v4 }
  0x1a   : > { %s1656_s8 = sshll.u32 %s191_s7, 5  ;;  %s1568_s7 = sshll.u32 %s2561_s28, 4  ;;  %s2647_s7 = int_to_ptr.vmem [resolvable:$true] %s1568_s7 }
  0x1b   : > { %s195_s9 = sadd.s32 %s1656_s8, %s2733_s6  ;;  %1827 = vmatprep.subr.mxu1 %v2347_v10  ;;  %s2054_s6 = smul.u32 36, %s2211_s16 }
  0x1c   : > { %s1657_s10 = sshll.u32 %s195_s9, 3  ;;  %s2129_s20 = scalar_lea.vmem %s2647_s7, 1152 }
  0x1d   : > { %s2339_s21 = scalar_lea.vmem %s2707_s0, %s1657_s10  ;;  %s1565_s15 = sadd.s32 %s2054_s6, %s1560_s5 }
  0x1e   : > { %v201_v5 = vld [vmem:[%s2339_s21] sm:$0xff]  ;;  %v202_v6 = vld [vmem:[%s2339_s21 + $0x8] sm:$0xff]  ;;  %v203_v7 = vld [vmem:[%s2339_s21 + $0x10] sm:$0xff]  ;;  %s1675_s16 = sshll.u32 %s1565_s15, 6  ;;  %p2130_p0 = scmp.ne.s32.totalorder %s2647_s7, %s2129_s20 }
  0x1f   : > { %v227_v8 = vsel %vm225_vm0, %v201_v5, 0  ;;  %v230_v9 = vsel %vm225_vm0, %v202_v6, 0  ;;  %v233_v11 = vsel %vm225_vm0, %v203_v7, 0  ;;  %v204_v12 = vld [vmem:[%s2339_s21 + $0x18] sm:$0xff]  ;;  %v205_v13 = vld [vmem:[%s2339_s21 + $0x20] sm:$0xff]  ;;  %v206_v18 = vld [vmem:[%s2339_s21 + $0x28] sm:$0xff]  ;;  %s2645_s10 = scalar_lea.hbm %s2710_s3, %s1675_s16 }
  0x20   : > { %v2352_v14 = vand.u32 4294901760, %v227_v8  ;;  %v2354_v15 = vand.u32 4294901760, %v230_v9  ;;  %v2356_v16 = vand.u32 4294901760, %v233_v11  ;;  %v236_v17 = vsel %vm225_vm0, %v204_v12, 0  ;;  %v207_v19 = vld [vmem:[%s2339_s21 + $0x30] sm:$0xff]  ;;  %v208_v24 = vld [vmem:[%s2339_s21 + $0x38] sm:$0xff]  ;;  %p2131_p1 = pnand %p2130_p0, %p2300_p3 }
  0x21   : > { %v2362_v20 = vand.u32 4294901760, %v236_v17  ;;  %v239_v21 = vsel %vm225_vm0, %v205_v13, 0  ;;  %v242_v22 = vsel %vm225_vm0, %v206_v18, 0  ;;  %v245_v23 = vsel %vm225_vm0, %v207_v19, 0  ;;  %v209_v49 = vld [vmem:[%s2339_s21 + $0x40] sm:$0xff]  ;;  %v210_v50 = vld [vmem:[%s2339_s21 + $0x48] sm:$0xff] }
  0x22   : > { %v2369_v25 = vsub.f32 %v227_v8, %v2352_v14  ;;  %v2372_v26 = vsub.f32 %v230_v9, %v2354_v15  ;;  %v2375_v27 = vsub.f32 %v233_v11, %v2356_v16  ;;  %v2377_v28 = vand.u32 4294901760, %v239_v21  ;;  %v211_v51 = vld [vmem:[%s2339_s21 + $0x50] sm:$0xff]  ;;  %v212_v59 = vld [vmem:[%s2339_s21 + $0x58] sm:$0xff]  ;;  %v213_v60 = vld [vmem:[%s2339_s21 + $0x60] sm:$0xff]  ;;  %p2132_p2 = pneg %p2131_p1 }
  0x23   : > { %v2380_v29 = vsub.f32 %v236_v17, %v2362_v20  ;;  %v2382_v30 = vand.u32 4294901760, %v242_v22  ;;  %v2384_v31 = vand.u32 4294901760, %v245_v23  ;;  %v248_v32 = vsel %vm225_vm0, %v208_v24, 0  ;;  %v214_v7 = vld [vmem:[%s2339_s21 + $0x68] sm:$0xff]  ;;  %v215_v8 = vld [vmem:[%s2339_s21 + $0x70] sm:$0xff] }
  0x24   : > { %v342_v33 = vand.u32 4294901760, %v2369_v25  ;;  %v352_v34 = vand.u32 4294901760, %v2372_v26  ;;  %v362_v35 = vand.u32 4294901760, %v2375_v27  ;;  %v2391_v36 = vsub.f32 %v239_v21, %v2377_v28 }
  0x25   : > { %v372_v37 = vand.u32 4294901760, %v2380_v29  ;;  %v2395_v38 = vsub.f32 %v242_v22, %v2382_v30  ;;  %v2398_v39 = vsub.f32 %v245_v23, %v2384_v31  ;;  %v2400_v40 = vand.u32 4294901760, %v248_v32 }
  0x26   : > { %1881 = vmatprep.mubr.f32.mxu0 %v342_v33  ;;  %v343_v41 = vsub.f32 %v2369_v25, %v342_v33  ;;  %v353_v42 = vsub.f32 %v2372_v26, %v352_v34  ;;  %v363_v43 = vsub.f32 %v2375_v27, %v362_v35  ;;  %v382_v44 = vand.u32 4294901760, %v2391_v36 }
  0x27   : > { %1882 = vmatmul.mubr.f32.vlgmr.msra.gmra.mrb[0].mxu0 %v352_v34  ;;  %v373_v45 = vsub.f32 %v2380_v29, %v372_v37  ;;  %v392_v46 = vand.u32 4294901760, %v2395_v38  ;;  %v402_v47 = vand.u32 4294901760, %v2398_v39  ;;  %v2410_v48 = vsub.f32 %v248_v32, %v2400_v40 }
  0x28   : > { %v344_v52 = vand.u32 4294901760, %v343_v41  ;;  %1884 = vmatprep.mubr.f32.mxu0 %v362_v35  ;;  %v354_v53 = vand.u32 4294901760, %v353_v42  ;;  %1906 = vmatpush3.msra.mxu0 %v503_v3  ;;  %v364_v54 = vand.u32 4294901760, %v363_v43  ;;  %v383_v55 = vsub.f32 %v2391_v36, %v382_v44 }
  0x29   : > { %v393_v56 = vsub.f32 %v2395_v38, %v392_v46  ;;  %v412_v57 = vand.u32 4294901760, %v2410_v48  ;;  %v403_v58 = vsub.f32 %v2398_v39, %v402_v47  ;;  %1931 = vmatprep.subr.mxu0 %v2325_v1  ;;  %v374_v61 = vand.u32 4294901760, %v373_v45 }
  0x2a   : > { %1803 = vmatprep.mubr.f32.mxu1 %v344_v52  ;;  %v251_v62 = vsel %vm225_vm0, %v209_v49, 0  ;;  %v254_v63 = vsel %vm225_vm0, %v210_v50, 0  ;;  %v257_v0 = vsel %vm225_vm0, %v211_v51, 0  ;;  %v384_v3 = vand.u32 4294901760, %v383_v55 }
  0x2b   : > { %1804 = vmatmul.mubr.f32.vlgmr.msra.gmra.mrb[0].mxu1 %v354_v53  ;;  %1885 = vmatmul.mubr.f32.gmra.mrb[2].mxu0 %v372_v37  ;;  %v394_v4 = vand.u32 4294901760, %v393_v56  ;;  %v404_v5 = vand.u32 4294901760, %v403_v58  ;;  %v2425_v6 = vand.u32 4294901760, %v251_v62  ;;  %v2430_v9 = vand.u32 4294901760, %v254_v63 }
  0x2c   : > { %1828 = vmatpush3.msra.mxu1 %v2347_v10  ;;  %1806 = vmatprep.mubr.f32.mxu1 %v364_v54  ;;  %v2432_v11 = vand.u32 4294901760, %v257_v0  ;;  %v260_v12 = vsel %vm225_vm0, %v212_v59, 0  ;;  %v263_v13 = vsel %vm225_vm0, %v213_v60, 0  ;;  %v413_v18 = vsub.f32 %v2410_v48, %v412_v57  ;;  %v216_v10 = vld [vmem:[%s2339_s21 + $0x78] sm:$0xff]  ;;  %s2226_s21 = smov [#allocation2]  }
  0x2d   : > { %1887 = vmatprep.mubr.f32.mxu0 %v382_v44  ;;  %v2437_v17 = vsub.f32 %v251_v62, %v2425_v6  ;;  %v2440_v19 = vand.u32 4294901760, %v260_v12  ;;  %v2442_v21 = vand.u32 4294901760, %v263_v13  ;;  %1853 = vmatprep.subr.mxu1 %v2331_v2  ;;  %v2447_v22 = vsub.f32 %v254_v63, %v2430_v9  ;;  %s2133_s27 = sshll.u32 %s2226_s21, 4  ;;  %s2134_s27 = int_to_ptr.vmem [resolvable:$false] %s2133_s27 }
  0x2e   : > { %v2450_v23 = vsub.f32 %v257_v0, %v2432_v11  ;;  %v266_v24 = vsel %vm225_vm0, %v214_v7, 0  ;;  %v269_v32 = vsel %vm225_vm0, %v215_v8, 0  ;;  %v272_v44 = vsel %vm225_vm0, %v216_v10, 0  ;;  %vm2600_vm0 = vmor %vm1456_vm7, %vm1457_vm8  ;;  %s2135_s29 = scalar_lea.vmem %s2134_s27, 2304  ;;  %p2136_p4 = scmp.lt.s32.totalorder %s2647_s7, %s2134_s27 }
  0x2f   : > { %1807 = vmatmul.mubr.f32.gmra.mrb[2].mxu1 %v374_v61  ;;  %1888 = vmatmul.mubr.f32.gmra.mrb[4].mxu0 %v392_v46  ;;  %v422_v33 = vand.u32 4294901760, %v2437_v17  ;;  %v2456_v34 = vsub.f32 %v260_v12, %v2440_v19  ;;  %v2459_v35 = vsub.f32 %v263_v13, %v2442_v21  ;;  %v2461_v37 = vand.u32 4294901760, %v266_v24  ;;  %p2137_p5 = scmp.lt.s32.totalorder %s2135_s29, %s2129_s20 }
  0x30   : > { %1809 = vmatprep.mubr.f32.mxu1 %v384_v3  ;;  %1890 = vmatprep.mubr.f32.mxu0 %v402_v47  ;;  %v432_v41 = vand.u32 4294901760, %v2447_v22  ;;  %v442_v42 = vand.u32 4294901760, %v2450_v23  ;;  %v2465_v43 = vand.u32 4294901760, %v269_v32  ;;  %v414_v46 = vand.u32 4294901760, %v413_v18 }
  0x31   : > { %v423_v45 = vsub.f32 %v2437_v17, %v422_v33  ;;  %v452_v50 = vand.u32 4294901760, %v2456_v34  ;;  %v2472_v51 = vsub.f32 %v266_v24, %v2461_v37  ;;  %v2474_v47 = vand.u32 4294901760, %v272_v44  ;;  %p2138_p6 = por %p2137_p5, %p2136_p4 }
  0x32   : > { %v433_v49 = vsub.f32 %v2447_v22, %v432_v41  ;;  %v443_v53 = vsub.f32 %v2450_v23, %v442_v42  ;;  %v462_v54 = vand.u32 4294901760, %v2459_v35  ;;  %v2479_v55 = vsub.f32 %v269_v32, %v2465_v43 }
  0x33   : > { %1810 = vmatmul.mubr.f32.gmra.mrb[4].mxu1 %v394_v4  ;;  %1891 = vmatmul.mubr.f32.gmra.mrb[6].mxu0 %v412_v57  ;;  %v424_v52 = vand.u32 4294901760, %v423_v45  ;;  %v453_v57 = vsub.f32 %v2456_v34, %v452_v50  ;;  %v472_v58 = vand.u32 4294901760, %v2472_v51  ;;  %v2484_v59 = vsub.f32 %v272_v44, %v2474_v47  ;;  %p2139_p7 = pnand %p2138_p6, %p2132_p2 }
  0x34   : > { %1812 = vmatprep.mubr.f32.mxu1 %v404_v5  ;;  %1893 = vmatprep.mubr.f32.mxu0 %v422_v33  ;;  %v434_v56 = vand.u32 4294901760, %v433_v49  ;;  %v444_v60 = vand.u32 4294901760, %v443_v53  ;;  %v463_v61 = vsub.f32 %v2459_v35, %v462_v54  ;;  %v482_v62 = vand.u32 4294901760, %v2479_v55 }
  0x35   : > { %v454_v63 = vand.u32 4294901760, %v453_v57  ;;  %v473_v0 = vsub.f32 %v2472_v51, %v472_v58  ;;  %v492_v3 = vand.u32 4294901760, %v2484_v59 }
  0x36   : > { %v464_v4 = vand.u32 4294901760, %v463_v61  ;;  %v483_v5 = vsub.f32 %v2479_v55, %v482_v62 }
  0x37   : > { %1813 = vmatmul.mubr.f32.gmra.mrb[6].mxu1 %v414_v46  ;;  %1894 = vmatmul.mubr.f32.gmra.mrb[8].mxu0 %v432_v41  ;;  %v474_v7 = vand.u32 4294901760, %v473_v0  ;;  %v493_v8 = vsub.f32 %v2484_v59, %v492_v3 }
  0x38   : > { %1815 = vmatprep.mubr.f32.mxu1 %v424_v52  ;;  %1896 = vmatprep.mubr.f32.mxu0 %v442_v42  ;;  %v484_v12 = vand.u32 4294901760, %v483_v5 }
  0x39   : > { %v494_v13 = vand.u32 4294901760, %v493_v8 }
  0x3b   : > { %1816 = vmatmul.mubr.f32.gmra.mrb[8].mxu1 %v434_v56  ;;  %1897 = vmatmul.mubr.f32.gmra.mrb[10].mxu0 %v452_v50 }
  0x3c   : > { %1818 = vmatprep.mubr.f32.mxu1 %v444_v60  ;;  %1899 = vmatprep.mubr.f32.mxu0 %v462_v54 }
  0x3f   : > { %1819 = vmatmul.mubr.f32.gmra.mrb[10].mxu1 %v454_v63  ;;  %1900 = vmatmul.mubr.f32.gmra.mrb[12].mxu0 %v472_v58 }
  0x40   : > { %1821 = vmatprep.mubr.f32.mxu1 %v464_v4  ;;  %1902 = vmatprep.mubr.f32.mxu0 %v482_v62 }
  0x43   : > { %1822 = vmatmul.mubr.f32.gmra.mrb[12].mxu1 %v474_v7  ;;  %1903 = vmatmul.mubr.f32.gmra.mrb[14].mxu0 %v492_v3 }
  0x44   : > { %1824 = vmatprep.mubr.f32.mxu1 %v484_v12  ;;  %1907 = vmatprep.mubr.f32.mxu0 %v2352_v14 }
  0x47   : > { %1825 = vmatmul.mubr.f32.gmra.mrb[14].mxu1 %v494_v13  ;;  %1908 = vmatmul.mubr.f32.vlgmr.msra.gmra.mrb[0].mxu0 %v2354_v15 }
  0x48   : > { %1829 = vmatprep.mubr.f32.mxu1 %v2352_v14  ;;  %1910 = vmatprep.mubr.f32.mxu0 %v2356_v16 }
  0x49   : > { %1932 = vmatpush3.msra.mxu0 %v2325_v1  ;;  %v2225_v1 = vmov 0  }
  0x4a   : > { %1430 = vst [vmem:[%s2561_s28 + $0x8] sm:$0x1] %v2225_v1  ;;  %1450 = vst [vmem:[%s2561_s28 + $0x10] sm:$0x2] %v2225_v1 }
  0x4b   : > { %1830 = vmatmul.mubr.f32.vlgmr.msra.gmra.mrb[0].mxu1 %v2354_v15  ;;  %1911 = vmatmul.mubr.f32.gmra.mrb[2].mxu0 %v2362_v20  ;;  %1470 = vst [vmem:[%s2561_s28 + $0x18] sm:$0x4] %v2225_v1  ;;  %1490 = vst [vmem:[%s2561_s28 + $0x20] sm:$0x8] %v2225_v1 }
  0x4c   : > { %1854 = vmatpush3.msra.mxu1 %v2331_v2  ;;  %1832 = vmatprep.mubr.f32.mxu1 %v2356_v16  ;;  %1500 = vst [vmem:[%s2561_s28 + $0x2c] sm:$0x1] %v2225_v1  ;;  %1517 = vst [vmem:[%s2561_s28 + $0x34] sm:$0x2] %v2225_v1 }
  0x4d   : > { %1913 = vmatprep.mubr.f32.mxu0 %v2377_v28  ;;  %1534 = vst [vmem:[%s2561_s28 + $0x3c] sm:$0x4] %v2225_v1  ;;  %1551 = vst [vmem:[%s2561_s28 + $0x44] sm:$0x8] %v2225_v1 }
  0x4f   : > { %1833 = vmatmul.mubr.f32.gmra.mrb[2].mxu1 %v2362_v20  ;;  %1914 = vmatmul.mubr.f32.gmra.mrb[4].mxu0 %v2382_v30 }
  0x50   : > { %1835 = vmatprep.mubr.f32.mxu1 %v2377_v28  ;;  %1916 = vmatprep.mubr.f32.mxu0 %v2384_v31 }
  0x53   : > { %1836 = vmatmul.mubr.f32.gmra.mrb[4].mxu1 %v2382_v30  ;;  %1917 = vmatmul.mubr.f32.gmra.mrb[6].mxu0 %v2400_v40 }
  0x54   : > { %1838 = vmatprep.mubr.f32.mxu1 %v2384_v31  ;;  %1919 = vmatprep.mubr.f32.mxu0 %v2425_v6 }
  0x57   : > { %1839 = vmatmul.mubr.f32.gmra.mrb[6].mxu1 %v2400_v40  ;;  %1920 = vmatmul.mubr.f32.gmra.mrb[8].mxu0 %v2430_v9 }
  0x58   : > { %1841 = vmatprep.mubr.f32.mxu1 %v2425_v6  ;;  %1922 = vmatprep.mubr.f32.mxu0 %v2432_v11 }
  0x5b   : > { %1842 = vmatmul.mubr.f32.gmra.mrb[8].mxu1 %v2430_v9  ;;  %1923 = vmatmul.mubr.f32.gmra.mrb[10].mxu0 %v2440_v19 }
  0x5c   : > { %1844 = vmatprep.mubr.f32.mxu1 %v2432_v11  ;;  %1925 = vmatprep.mubr.f32.mxu0 %v2442_v21 }
  0x5f   : > { %1845 = vmatmul.mubr.f32.gmra.mrb[10].mxu1 %v2440_v19  ;;  %1926 = vmatmul.mubr.f32.gmra.mrb[12].mxu0 %v2461_v37 }
  0x60   : > { %1847 = vmatprep.mubr.f32.mxu1 %v2442_v21  ;;  %1928 = vmatprep.mubr.f32.mxu0 %v2465_v43 }
  0x63   : > { %1848 = vmatmul.mubr.f32.gmra.mrb[12].mxu1 %v2461_v37  ;;  %1929 = vmatmul.mubr.f32.gmra.mrb[14].mxu0 %v2474_v47 }
  0x64   : > { %1850 = vmatprep.mubr.f32.mxu1 %v2465_v43  ;;  %1933 = vmatprep.mubr.f32.mxu0 %v2352_v14 }
  0x67   : > { %1851 = vmatmul.mubr.f32.gmra.mrb[14].mxu1 %v2474_v47  ;;  %1934 = vmatmul.mubr.f32.vlgmr.msra.gmra.mrb[0].mxu0 %v2354_v15  ;;  %v2574_v15 = vld [vmem:[%s2709_s2] ss:$0 sm:$0xff] }
  0x68   : > { %1855 = vmatprep.mubr.f32.mxu1 %v2369_v25  ;;  %1936 = vmatprep.mubr.f32.mxu0 %v2356_v16 }
  0x6b   : > { %1856 = vmatmul.mubr.f32.vlgmr.msra.gmra.mrb[0].mxu1 %v2372_v26  ;;  %1937 = vmatmul.mubr.f32.gmra.mrb[2].mxu0 %v2362_v20 }
  0x6c   : > { %1858 = vmatprep.mubr.f32.mxu1 %v2375_v27  ;;  %1939 = vmatprep.mubr.f32.mxu0 %v2377_v28 }
  0x6f   : > { %1859 = vmatmul.mubr.f32.gmra.mrb[2].mxu1 %v2380_v29  ;;  %1940 = vmatmul.mubr.f32.gmra.mrb[4].mxu0 %v2382_v30 }
  0x70   : > { %1861 = vmatprep.mubr.f32.mxu1 %v2391_v36  ;;  %1942 = vmatprep.mubr.f32.mxu0 %v2384_v31 }
  0x73   : > { %1862 = vmatmul.mubr.f32.gmra.mrb[4].mxu1 %v2395_v38  ;;  %1943 = vmatmul.mubr.f32.gmra.mrb[6].mxu0 %v2400_v40 }
  0x74   : > { %1864 = vmatprep.mubr.f32.mxu1 %v2398_v39  ;;  %1945 = vmatprep.mubr.f32.mxu0 %v2425_v6 }
  0x77   : > { %1865 = vmatmul.mubr.f32.gmra.mrb[6].mxu1 %v2410_v48  ;;  %1946 = vmatmul.mubr.f32.gmra.mrb[8].mxu0 %v2430_v9 }
  0x78   : > { %1867 = vmatprep.mubr.f32.mxu1 %v2437_v17  ;;  %1948 = vmatprep.mubr.f32.mxu0 %v2432_v11 }
  0x7b   : > { %1868 = vmatmul.mubr.f32.gmra.mrb[8].mxu1 %v2447_v22  ;;  %1949 = vmatmul.mubr.f32.gmra.mrb[10].mxu0 %v2440_v19 }
  0x7c   : > { %1870 = vmatprep.mubr.f32.mxu1 %v2450_v23  ;;  %1951 = vmatprep.mubr.f32.mxu0 %v2442_v21 }
  0x7f   : > { %1871 = vmatmul.mubr.f32.gmra.mrb[10].mxu1 %v2456_v34  ;;  %1952 = vmatmul.mubr.f32.gmra.mrb[12].mxu0 %v2461_v37 }
  0x80   : > { %1873 = vmatprep.mubr.f32.mxu1 %v2459_v35  ;;  %1954 = vmatprep.mubr.f32.mxu0 %v2465_v43 }
  0x83   : > { %1874 = vmatmul.mubr.f32.gmra.mrb[12].mxu1 %v2472_v51  ;;  %1955 = vmatmul.mubr.f32.gmra.mrb[14].mxu0 %v2474_v47 }
  0x84   : > { %1876 = vmatprep.mubr.f32.mxu1 %v2479_v55 }
  0x87   : > { %1877 = vmatmul.mubr.f32.gmra.mrb[14].mxu1 %v2484_v59 }
 0x13a   : > { %v1935_v2 = vpop.f32.mrb[0].mxu0 }
 0x13b   : > { %v1271_v14 = vpop.f32.mrb[1].mxu0 }
 0x13e   : > { %v1857_v16 = vpop.f32.mrb[0].mxu1  ;;  %v1938_v20 = vpop.f32.mrb[2].mxu0 }
 0x13f   : > { %v1957_v25 = vadd.f32 %v1857_v16, %v2574_v15  ;;  %v736_v26 = vpop.f32.mrb[1].mxu1  ;;  %v1283_v27 = vpop.f32.mrb[3].mxu0 }
 0x140   : > { %v1959_v28 = vadd.f32 %v2574_v15, %v736_v26 }
 0x141   : > { %v1958_v29 = vadd.f32 %v1957_v25, %v1935_v2 }
 0x142   : > { %v1960_v30 = vadd.f32 %v1959_v28, %v1271_v14  ;;  %v1860_v31 = vpop.f32.mrb[2].mxu1  ;;  %v1941_v36 = vpop.f32.mrb[4].mxu0 }
 0x143   : > { %vm1366_vm1 = vcmp.ge.f32.partialorder %v1958_v29, 0.0  ;;  %v1382_v38 = vmul.f32 0.2, %v1958_v29  ;;  %v1961_v39 = vadd.f32 %v1860_v31, %v2574_v15  ;;  %v750_v40 = vpop.f32.mrb[3].mxu1  ;;  %v1295_v48 = vpop.f32.mrb[5].mxu0 }
 0x144   : > { %vm1365_vm2 = vcmp.ge.f32.partialorder %v1960_v30, 0.0  ;;  %v1381_v6 = vmul.f32 0.2, %v1960_v30  ;;  %v1963_v9 = vadd.f32 %v2574_v15, %v750_v40 }
 0x145   : > { %v1398_v11 = vsel %vm1366_vm1, %v1958_v29, %v1382_v38  ;;  %v1962_v17 = vadd.f32 %v1961_v39, %v1938_v20 }
 0x146   : > { %v1397_v18 = vsel %vm1365_vm2, %v1960_v30, %v1381_v6  ;;  %v1964_v19 = vadd.f32 %v1963_v9, %v1283_v27  ;;  %v1863_v21 = vpop.f32.mrb[4].mxu1  ;;  %v1944_v10 = vpop.f32.mrb[6].mxu0 }
 0x147   : > { %v1697_v22 = vpack.c.bf16 %v1398_v11, %v1397_v18  ;;  %vm1368_vm3 = vcmp.ge.f32.partialorder %v1962_v17, 0.0  ;;  %v1384_v23 = vmul.f32 0.2, %v1962_v17  ;;  %v1965_v24 = vadd.f32 %v1863_v21, %v2574_v15  ;;  %v764_v32 = vpop.f32.mrb[5].mxu1  ;;  %v1307_v33 = vpop.f32.mrb[7].mxu0 }
 0x148   : > { %vm1367_vm4 = vcmp.ge.f32.partialorder %v1964_v19, 0.0  ;;  %v1383_v34 = vmul.f32 0.2, %v1964_v19  ;;  %v1967_v35 = vadd.f32 %v2574_v15, %v764_v32 }
 0x149   : > { %1698 = vst [vmem:[%s2561_s28] sm:$0xff] %v1697_v22   ;;  %v1400_v37 = vsel %vm1368_vm3, %v1962_v17, %v1384_v23  ;;  %v1966_v41 = vadd.f32 %v1965_v24, %v1941_v36  ;;  %vm2613_vm3 = vmor %vm1476_vm10, %vm1477_vm12 }
 0x14a   : > { %v1681_v42 = vpack.c.bf16 %v1400_v37, %v1400_v37  ;;  %v1399_v43 = vsel %vm1367_vm4, %v1964_v19, %v1383_v34  ;;  %v1968_v44 = vadd.f32 %v1967_v35, %v1295_v48  ;;  %v1866_v45 = vpop.f32.mrb[6].mxu1  ;;  %v1947_v46 = vpop.f32.mrb[8].mxu0 }
 0x14b   : > { %v1680_v49 = vpack.c.bf16 %v1399_v43, %v1399_v43  ;;  %vm1370_vm9 = vcmp.ge.f32.partialorder %v1966_v41, 0.0  ;;  %v1386_v50 = vmul.f32 0.2, %v1966_v41  ;;  %v1969_v51 = vadd.f32 %v1866_v45, %v2574_v15  ;;  %v778_v47 = vpop.f32.mrb[7].mxu1  ;;  %v1319_v52 = vpop.f32.mrb[9].mxu0 }
 0x14c   : > { %v1441_v53 = vrot.slane %v1681_v42, 7  ;;  %vm1369_vm11 = vcmp.ge.f32.partialorder %v1968_v44, 0.0  ;;  %v1385_v54 = vmul.f32 0.2, %v1968_v44  ;;  %v1971_v55 = vadd.f32 %v2574_v15, %v778_v47 }
 0x14d   : > { %v1439_v56 = vrot.slane %v1680_v49, 7  ;;  %v1402_v57 = vsel %vm1370_vm9, %v1966_v41, %v1386_v50  ;;  %v1970_v58 = vadd.f32 %v1969_v51, %v1944_v10 }
 0x14e   : > { %v1443_v59 = vrot.slane %v1441_v53, 4  ;;  %v1683_v61 = vpack.c.bf16 %v1402_v57, %v1402_v57  ;;  %v1401_v62 = vsel %vm1369_vm11, %v1968_v44, %v1385_v54  ;;  %v1972_v63 = vadd.f32 %v1971_v55, %v1307_v33  ;;  %v1869_v0 = vpop.f32.mrb[8].mxu1  ;;  %v1950_v3 = vpop.f32.mrb[10].mxu0 }
 0x14f   : > { %v1440_v4 = vrot.slane %v1439_v56, 4  ;;  %1447 = vst [vmem:[%s2561_s28 + $0x8] sm:$0xe] %v1439_v56  ;;  %v1682_v5 = vpack.c.bf16 %v1401_v62, %v1401_v62  ;;  %vm1372_vm14 = vcmp.ge.f32.partialorder %v1970_v58, 0.0  ;;  %v1388_v7 = vmul.f32 0.2, %v1970_v58 }
 0x150   : > { %v792_v8 = vpop.f32.mrb[9].mxu1  ;;  %v1331_v12 = vpop.f32.mrb[11].mxu0  ;;  %1449 = vst [vmem:[%s2561_s28 + $0x10] sm:$0x1] %v1443_v59  ;;  %v1461_v13 = vrot.slane %v1683_v61, 6  ;;  %vm1371_vm15 = vcmp.ge.f32.partialorder %v1972_v63, 0.0  ;;  %v1973_v2 = vadd.f32 %v1869_v0, %v2574_v15 }
 0x151   : > { %v1387_v1 = vmul.f32 0.2, %v1972_v63  ;;  %v1442_v14 = vsel %vm2587_vm13, %v1440_v4, %v1441_v53  ;;  %v1459_v16 = vrot.slane %v1682_v5, 6  ;;  %v1404_v20 = vsel %vm1372_vm14, %v1970_v58, %v1388_v7 }
 0x152   : > { %v1975_v25 = vadd.f32 %v2574_v15, %v792_v8  ;;  %1448 = vst [vmem:[%s2561_s28 + $0xc] sm:$0xf] %v1442_v14  ;;  %v1463_v26 = vrot.slane %v1461_v13, 4  ;;  %v1685_v28 = vpack.c.bf16 %v1404_v20, %v1404_v20  ;;  %v1974_v30 = vadd.f32 %v1973_v2, %v1947_v46  ;;  %v1872_v31 = vpop.f32.mrb[10].mxu1  ;;  %v1953_v36 = vpop.f32.mrb[12].mxu0 }
 0x153   : > { %v1403_v29 = vsel %vm1371_vm15, %v1972_v63, %v1387_v1  ;;  %v1460_v38 = vrot.slane %v1459_v16, 4  ;;  %1467 = vst [vmem:[%s2561_s28 + $0x10] sm:$0xc] %v1459_v16  ;;  %v1977_v48 = vadd.f32 %v1872_v31, %v2574_v15  ;;  %v806_v6 = vpop.f32.mrb[11].mxu1  ;;  %v1343_v9 = vpop.f32.mrb[13].mxu0 }
 0x154   : > { %v1684_v39 = vpack.c.bf16 %v1403_v29, %v1403_v29  ;;  %v1976_v40 = vadd.f32 %v1975_v25, %v1319_v52  ;;  %1469 = vst [vmem:[%s2561_s28 + $0x18] sm:$0x3] %v1463_v26  ;;  %v1481_v11 = vrot.slane %v1685_v28, 5  ;;  %vm1374_vm1 = vcmp.ge.f32.partialorder %v1974_v30, 0.0 }
 0x155   : > { %v1390_v17 = vmul.f32 0.2, %v1974_v30  ;;  %v1979_v18 = vadd.f32 %v2574_v15, %v806_v6  ;;  %v1462_v19 = vsel %vm2600_vm0, %v1460_v38, %v1461_v13  ;;  %v1978_v32 = vadd.f32 %v1977_v48, %v1950_v3 }
 0x156   : > { %v1479_v21 = vrot.slane %v1684_v39, 5  ;;  %vm1373_vm2 = vcmp.ge.f32.partialorder %v1976_v40, 0.0  ;;  %v1389_v10 = vmul.f32 0.2, %v1976_v40  ;;  %1468 = vst [vmem:[%s2561_s28 + $0x14] sm:$0xf] %v1462_v19 }
 0x157   : > { %v1483_v22 = vrot.slane %v1481_v11, 4  ;;  %v1406_v24 = vsel %vm1374_vm1, %v1974_v30, %v1390_v17  ;;  %v1980_v33 = vadd.f32 %v1979_v18, %v1331_v12  ;;  %v1875_v34 = vpop.f32.mrb[12].mxu1  ;;  %v1956_v35 = vpop.f32.mrb[14].mxu0  ;;  %vm1376_vm4 = vcmp.ge.f32.partialorder %v1978_v32, 0.0 }
 0x158   : > { %v1480_v37 = vrot.slane %v1479_v21, 4  ;;  %1487 = vst [vmem:[%s2561_s28 + $0x18] sm:$0x8] %v1479_v21  ;;  %v1687_v41 = vpack.c.bf16 %v1406_v24, %v1406_v24  ;;  %v1405_v42 = vsel %vm1373_vm2, %v1976_v40, %v1389_v10  ;;  %v1981_v43 = vadd.f32 %v1875_v34, %v2574_v15  ;;  %v820_v44 = vpop.f32.mrb[13].mxu1  ;;  %v1355_v45 = vpop.f32.mrb[15].mxu0 }
 0x159   : > { %1489 = vst [vmem:[%s2561_s28 + $0x20] sm:$0x7] %v1483_v22  ;;  %v1686_v46 = vpack.c.bf16 %v1405_v42, %v1405_v42  ;;  %v1392_v49 = vmul.f32 0.2, %v1978_v32  ;;  %vm1375_vm5 = vcmp.ge.f32.partialorder %v1980_v33, 0.0  ;;  %v1983_v52 = vadd.f32 %v2574_v15, %v820_v44 }
 0x15a   : > { %v1482_v50 = vsel %vm2613_vm3, %v1480_v37, %v1481_v11  ;;  %1499 = vst [vmem:[%s2561_s28 + $0x28] sm:$0xf] %v1687_v41  ;;  %v1391_v51 = vmul.f32 0.2, %v1980_v33  ;;  %v1982_v47 = vadd.f32 %v1981_v43, %v1953_v36  ;;  %v1878_v54 = vpop.f32.mrb[14].mxu1 }
 0x15b   : > { %1488 = vst [vmem:[%s2561_s28 + $0x1c] sm:$0xf] %v1482_v50  ;;  %1498 = vst [vmem:[%s2561_s28 + $0x24] sm:$0xf] %v1686_v46  ;;  %v1408_v53 = vsel %vm1376_vm4, %v1978_v32, %v1392_v49  ;;  %v834_v58 = vpop.f32.mrb[15].mxu1  ;;  %v1984_v61 = vadd.f32 %v1983_v52, %v1343_v9  ;;  %v1985_v62 = vadd.f32 %v1878_v54, %v2574_v15 }
 0x15c   : > { %v1689_v55 = vpack.c.bf16 %v1408_v53, %v1408_v53  ;;  %v1407_v56 = vsel %vm1375_vm5, %v1980_v33, %v1391_v51  ;;  %vm1378_vm6 = vcmp.ge.f32.partialorder %v1982_v47, 0.0  ;;  %v1394_v57 = vmul.f32 0.2, %v1982_v47 }
 0x15d   : > { %v1688_v59 = vpack.c.bf16 %v1407_v56, %v1407_v56  ;;  %v1987_v63 = vadd.f32 %v2574_v15, %v834_v58  ;;  %vm1377_vm7 = vcmp.ge.f32.partialorder %v1984_v61, 0.0  ;;  %v1393_v7 = vmul.f32 0.2, %v1984_v61 }
 0x15e   : > { %v1508_v0 = vrot.slane %v1689_v55, 7  ;;  %v1410_v3 = vsel %vm1378_vm6, %v1982_v47, %v1394_v57  ;;  %v1986_v12 = vadd.f32 %v1985_v62, %v1956_v35 }
 0x15f   : > { %v1506_v4 = vrot.slane %v1688_v59, 7  ;;  %v1691_v5 = vpack.c.bf16 %v1410_v3, %v1410_v3  ;;  %v1988_v13 = vadd.f32 %v1987_v63, %v1355_v45  ;;  %v1409_v14 = vsel %vm1377_vm7, %v1984_v61, %v1393_v7 }
 0x160   : > { %v1510_v8 = vrot.slane %v1508_v0, 4  ;;  %v1690_v15 = vpack.c.bf16 %v1409_v14, %v1409_v14  ;;  %vm1380_vm8 = vcmp.ge.f32.partialorder %v1986_v12, 0.0  ;;  %v1396_v16 = vmul.f32 0.2, %v1986_v12 }
 0x161   : > { %v1507_v1 = vrot.slane %v1506_v4, 4  ;;  %1514 = vst [vmem:[%s2561_s28 + $0x2c] sm:$0xe] %v1506_v4  ;;  %v1525_v2 = vrot.slane %v1691_v5, 6  ;;  %vm1379_vm9 = vcmp.ge.f32.partialorder %v1988_v13, 0.0 }
 0x162   : > { %1516 = vst [vmem:[%s2561_s28 + $0x34] sm:$0x1] %v1510_v8  ;;  %v1395_v26 = vmul.f32 0.2, %v1988_v13  ;;  %v1523_v28 = vrot.slane %v1690_v15, 6  ;;  %v1412_v29 = vsel %vm1380_vm8, %v1986_v12, %v1396_v16 }
 0x163   : > { %v1509_v20 = vsel %vm2587_vm13, %v1507_v1, %v1508_v0  ;;  %v1527_v25 = vrot.slane %v1525_v2, 4  ;;  %v1693_v30 = vpack.c.bf16 %v1412_v29, %v1412_v29 }
 0x164   : > { %1515 = vst [vmem:[%s2561_s28 + $0x30] sm:$0xf] %v1509_v20  ;;  %v1411_v31 = vsel %vm1379_vm9, %v1988_v13, %v1395_v26  ;;  %v1524_v36 = vrot.slane %v1523_v28, 4  ;;  %1531 = vst [vmem:[%s2561_s28 + $0x34] sm:$0xc] %v1523_v28 }
 0x165   : > { %1533 = vst [vmem:[%s2561_s28 + $0x3c] sm:$0x3] %v1527_v25  ;;  %v1692_v38 = vpack.c.bf16 %v1411_v31, %v1411_v31  ;;  %v1542_v60 = vrot.slane %v1693_v30, 5 }
 0x166   : > { %v1526_v39 = vsel %vm2600_vm0, %v1524_v36, %v1525_v2 }
 0x167   : > { %v1540_v40 = vrot.slane %v1692_v38, 5  ;;  %1532 = vst [vmem:[%s2561_s28 + $0x38] sm:$0xf] %v1526_v39  ;;  %v1544_v48 = vrot.slane %v1542_v60, 4 }
 0x169   : > { %v1541_v6 = vrot.slane %v1540_v40, 4  ;;  %1548 = vst [vmem:[%s2561_s28 + $0x3c] sm:$0x8] %v1540_v40  ;;  %1550 = vst [vmem:[%s2561_s28 + $0x44] sm:$0x7] %v1544_v48 }
 0x16b   : > { %v1543_v27 = vsel %vm2613_vm3, %v1541_v6, %v1542_v60 }
 0x16c   : > { %1549 = vst [vmem:[%s2561_s28 + $0x40] sm:$0xf] %v1543_v27 }
 0x16d   : > { %2142 = shalt.err (!%p2139_p7)
}
 0x16e   : > { %s2143_s24 = scalar_lea.hbm %s2645_s10, 1152  ;;  %s2147_s5 = scalar_lea.hbm %s2710_s3, 4608 }
 0x16f   : > { %p2144_p9 = scmp.ne.s32.totalorder %s2645_s10, %s2143_s24  ;;  %p2148_p12 = scmp.lt.u32.totalorder %s2645_s10, %s2710_s3 }
 0x170   : > { %p2149_p13 = scmp.lt.u32.totalorder %s2147_s5, %s2143_s24  ;;  %p2151_p1 = scmp.lt.u32.totalorder %s2143_s24, %s2645_s10 }
 0x171   : > { %p2145_p10 = pnand %p2144_p9, %p2300_p3 }
 0x172   : > { %p2150_p0 = por %p2149_p13, %p2148_p12 }
 0x173   : > { %p2146_p11 = pneg %p2145_p10 }
 0x174   : > { %p2152_p2 = por %p2151_p1, %p2150_p0 }
 0x176   : > { %p2153_p4 = pnand %p2152_p2, %p2146_p11 }
 0x178   : > { %2156 = shalt.err (!%p2153_p4)
}
 0x179   : > { %s2227_s16 = smov 64   ;;  %s2228_s8 = smov 4  }
 0x17a   : > { %2055 = dma.vmem_to_hbm [thread:$0]  (%p2300_p3), %s2647_s7, 1152, %s2645_s10, %s2655_s11, %s2227_s16, %s2227_s16, %s2228_s8  }
 0x17b PF: > { %p2061_p5 = scmp.ge.s32.totalorder %s2223_s19, 2  ;;  %s1583_s9 = sand.u32 1, %s2195_s12  }
 0x17c   : > { %s1584_s20 = scalar_lea.sflag [#allocation3], %s1583_s9 }
 0x17d   : > { %p2058_p6 = pnand %p2061_p5, %p2309_p8 }
 0x17f   : > { %2190 = dma.done.wait (!%p2058_p6), %s1584_s20, 1152  }
 0x180   : > { %2192 = vsyncadd (!%p2058_p6), %s1584_s20, 4294966144  ;;  %s16_s19 = sadd.s32 1, %s2223_s19   ;;  %s2719_s12 = smov %s2199_s13 }
 0x181   : > { %p13_p7 = scmp.ge.s32.totalorder %s16_s19, 6   ;;  %s2720_s13 = smov %s2203_s14 }
 0x182   : > { %s2721_s14 = smov %s2318_s30  ;;  %s2722_s15 = smov %s2215_s17 }
 0x183   : > { %s2723_s16 = smov %s2219_s18  ;;  %s2724_s17 = smov %s2727_s22 }
 0x184   : > { %s2725_s18 = smov %s2731_s23  ;;  %15 = sbr.rel (!%p13_p7) target bundleno = 5 (0x5), region = 67 }
 0x18b   :  { %1589 = vsyncpa [#allocation3], 1 }
 0x18c   :  { %1591 = vsyncpa [#allocation3 + $0x1], 1 }

</bundles_post_ra>
